<compile_context>
chip_gen: v7x
topology: tpu7x:2x2x1
jax: 0.10.0
libtpu: 0.0.40
codegen_flags: <defaults>
</compile_context>

<pallas_src>
import functools

import jax
import jax.numpy as jnp
from jax import lax
from jax.experimental import pallas as pl
from jax.experimental.pallas import tpu as pltpu

n_embed = 384
block_size = 64  # causal mask size upper bound (T <= block_size)


# ---------------------------------------------------------------------------
# One-time parameter packing (hoisted out of the per-call path).
# ---------------------------------------------------------------------------
def pack_mha_params(wq, wk, wv, wproj, bproj):
    """Pack per-head weights once.

    * wq/wk/wv (H, C, hs) are stacked head-major into a single (C, 3*H*hs)
      bf16 matrix so the QKV projection is one wide MXU matmul.  Column order
      is [Q heads | K heads | V heads], matching torch.cat head order.
    * The 1/sqrt(head_size) attention scale is folded into the Q columns.
    """
    H, C, hs = wq.shape
    scale = float(hs) ** -0.5
    wq_f = (jnp.transpose(wq, (1, 0, 2)) * scale).reshape(C, H * hs)
    wk_f = jnp.transpose(wk, (1, 0, 2)).reshape(C, H * hs)
    wv_f = jnp.transpose(wv, (1, 0, 2)).reshape(C, H * hs)
    wqkv = jnp.concatenate([wq_f, wk_f, wv_f], axis=-1).astype(jnp.bfloat16)
    wproj_bf = wproj.astype(jnp.bfloat16)
    bproj2 = bproj.reshape(1, -1).astype(jnp.float32)
    return wqkv, wproj_bf, bproj2


# ---------------------------------------------------------------------------
# Fused kernel: Bt batch elements per grid step.
#   qkv = x @ Wqkv                      (one (Bt*T, C)x(C, 3*H*hs) MXU matmul)
#   per head: softmax(mask(q k^T)) @ v  (Bt-batched dots, scale pre-folded)
#   y = concat_heads @ Wproj + bproj    (one (Bt*T, H*hs)x(H*hs, 384) matmul)
# ---------------------------------------------------------------------------
def _make_fused_mha_kernel(num_heads, head_size):
    h_hs = num_heads * head_size

    def kernel(x_ref, wqkv_ref, wproj_ref, bproj_ref, o_ref, qkv_sc, cat_sc):
        # x_ref:     (Bt, T, C)        f32
        # wqkv_ref:  (C, 3*H*hs)       bf16  (Q columns pre-scaled)
        # wproj_ref: (H*hs, n_embed)   bf16
        # bproj_ref: (1, n_embed)      f32
        # o_ref:     (Bt, T, n_embed)  f32
        # qkv_sc:    (Bt, T, 3*H*hs)   bf16 VMEM scratch
        # cat_sc:    (Bt, T, H*hs)     bf16 VMEM scratch
        Bt, T, C = x_ref.shape

        # --- QKV projection for all heads / all Bt*T rows: one MXU matmul ---
        x2 = x_ref[...].reshape(Bt * T, C).astype(jnp.bfloat16)
        qkv = jnp.dot(x2, wqkv_ref[...], preferred_element_type=jnp.float32)
        # Single wide bf16 cast, staged through VMEM so the per-head live set
        # stays small (the full f32 qkv never has to stay resident in vregs).
        qkv_sc[...] = qkv.astype(jnp.bfloat16).reshape(Bt, T, 3 * h_hs)

        # Static causal mask (tril), built once, broadcast over Bt.
        row = lax.broadcasted_iota(jnp.int32, (T, T), 0)
        col = lax.broadcasted_iota(jnp.int32, (T, T), 1)
        causal = col <= row

        # --- per-head attention core, batched over Bt ---
        for h in range(num_heads):
            q_sl = slice(h * head_size, (h + 1) * head_size)
            k_sl = slice(h_hs + h * head_size, h_hs + (h + 1) * head_size)
            v_sl = slice(2 * h_hs + h * head_size, 2 * h_hs + (h + 1) * head_size)
            q_h = qkv_sc[:, :, q_sl]                    # (Bt, T, hs) bf16
            k_h = qkv_sc[:, :, k_sl]                    # (Bt, T, hs) bf16
            v_h = qkv_sc[:, :, v_sl]                    # (Bt, T, hs) bf16

            # Bt-batched q @ k^T (contract last dims, no transpose).
            s = lax.dot_general(
                q_h, k_h,
                dimension_numbers=(((2,), (2,)), ((0,), (0,))),
                preferred_element_type=jnp.float32,
            )                                           # (Bt, T, T) f32
            s = jnp.where(causal, s, -jnp.inf)
            # Numerically-stable softmax in f32; divide goes to the EUP.
            s = s - jnp.max(s, axis=-1, keepdims=True)
            p = jnp.exp(s)
            inv = pl.reciprocal(jnp.sum(p, axis=-1, keepdims=True), approx=True)
            p = p * inv
            # TODO(synk): attention-weight dropout (p=0.2) skipped (eval mode).

            att = lax.dot_general(
                p.astype(jnp.bfloat16), v_h,
                dimension_numbers=(((2,), (1,)), ((0,), (0,))),
                preferred_element_type=jnp.float32,
            )                                           # (Bt, T, hs) f32
            # Write straight into the "concat" scratch slice (no jnp.concatenate).
            cat_sc[:, :, h * head_size:(h + 1) * head_size] = att.astype(jnp.bfloat16)

        # --- output projection, all Bt*T rows in one MXU matmul ---
        y = jnp.dot(
            cat_sc[...].reshape(Bt * T, h_hs),
            wproj_ref[...],
            preferred_element_type=jnp.float32,
        ) + bproj_ref[...]                              # (Bt*T, n_embed) f32
        # TODO(synk): output dropout (p=0.2) skipped (eval mode).
        o_ref[...] = y.reshape(Bt, T, n_embed)

    return kernel


def _pick_bt(B, T):
    """Batch elements per grid step.

    Target ~256 rows per wide matmul (fills the 256-wide MXU M dim on v6e/v7x,
    oversubscribes v5e's 128-wide MXU only mildly), keep the grid length >= 2
    so v7x's two TensorCores both get work, and prefer a divisor of B so the
    last block is not ragged.
    """
    target_rows = 256
    bt = max(1, min(B, target_rows // max(T, 1)))
    while bt > 1 and -(-B // bt) < 2:       # keep grid >= 2 (v7x megacore)
        bt -= 1
    while bt > 1 and B % bt != 0:           # avoid ragged last block
        bt -= 1
    return bt


@functools.partial(jax.jit, static_argnames=("num_heads", "head_size", "block_bt"))
def multi_head_attention(x, wqkv, wproj_bf, bproj2, *, num_heads, head_size,
                         block_bt=None):
    """x: (B, T, C) f32; packed weights from pack_mha_params()."""
    B, T, C = x.shape
    h_hs = num_heads * head_size
    bt = block_bt if block_bt is not None else _pick_bt(B, T)

    # Handle B % bt != 0 by zero-padding the batch (padded rows are discarded).
    rem = B % bt
    if rem:
        x = jnp.concatenate([x, jnp.zeros((bt - rem, T, C), x.dtype)], axis=0)
    Bp = x.shape[0]

    kernel = _make_fused_mha_kernel(num_heads, head_size)

    y = pl.pallas_call(
        kernel,
        out_shape=jax.ShapeDtypeStruct((Bp, T, n_embed), jnp.float32),
        grid_spec=pltpu.PrefetchScalarGridSpec(
            num_scalar_prefetch=0,
            grid=(Bp // bt,),
            in_specs=[
                pl.BlockSpec((bt, T, C), lambda b: (b, 0, 0)),
                # Constant index_maps: weights stay VMEM-resident across batch.
                pl.BlockSpec((C, 3 * h_hs), lambda b: (0, 0)),
                pl.BlockSpec((h_hs, n_embed), lambda b: (0, 0)),
                pl.BlockSpec((1, n_embed), lambda b: (0, 0)),
            ],
            out_specs=pl.BlockSpec((bt, T, n_embed), lambda b: (b, 0, 0)),
            scratch_shapes=[
                pltpu.VMEM((bt, T, 3 * h_hs), jnp.bfloat16),  # staged qkv
                pltpu.VMEM((bt, T, h_hs), jnp.bfloat16),      # concat of heads
            ],
        ),
        compiler_params=pltpu.CompilerParams(
            dimension_semantics=("parallel",)
        ),
    )(x, wqkv, wproj_bf, bproj2)

    return y[:B] if rem else y


# ---------------------------------------------------------------------------
# Pure-JAX f32 reference (mirrors the PyTorch forward in eval mode)
# ---------------------------------------------------------------------------
def _reference(x, wq, wk, wv, wproj, bproj):
    B, T, C = x.shape
    H, _, hs = wq.shape
    outs = []
    for h in range(H):
        q = x @ wq[h]
        k = x @ wk[h]
        v = x @ wv[h]
        wei = (q @ jnp.swapaxes(k, -2, -1)) * (float(hs) ** -0.5)
        mask = jnp.tril(jnp.ones((T, T), dtype=bool))
        wei = jnp.where(mask, wei, -jnp.inf)
        wei = jax.nn.softmax(wei, axis=-1)
        outs.append(wei @ v)
    cat = jnp.concatenate(outs, axis=-1)
    return cat @ wproj + bproj


if __name__ == "__main__":
    B = 2          # batch
    T = 8          # sequence length (<= block_size)
    H = 2          # num_heads
    hs = 64        # head_size
    C = n_embed    # embedding dim = 384 (fixed by the module)

    key = jax.random.PRNGKey(0)
    kx, kq, kk, kv, kp, kb = jax.random.split(key, 6)

    x = jax.random.normal(kx, (B, T, C), dtype=jnp.float32)
    scale_in = 1.0 / jnp.sqrt(jnp.float32(C))
    wq = jax.random.normal(kq, (H, C, hs), dtype=jnp.float32) * scale_in
    wk = jax.random.normal(kk, (H, C, hs), dtype=jnp.float32) * scale_in
    wv = jax.random.normal(kv, (H, C, hs), dtype=jnp.float32) * scale_in
    scale_proj = 1.0 / jnp.sqrt(jnp.float32(H * hs))
    wproj = jax.random.normal(kp, (H * hs, n_embed), dtype=jnp.float32) * scale_proj
    bproj = jax.random.normal(kb, (n_embed,), dtype=jnp.float32) * 0.01

    # One-time weight packing (not on the per-forward path).
    wqkv, wproj_bf, bproj2 = pack_mha_params(wq, wk, wv, wproj, bproj)
    wqkv, wproj_bf, bproj2 = jax.block_until_ready((wqkv, wproj_bf, bproj2))

    y = multi_head_attention(x, wqkv, wproj_bf, bproj2, num_heads=H, head_size=hs)
    y = jax.block_until_ready(y)

    y_ref = _reference(x, wq, wk, wv, wproj, bproj)
    assert y.shape == (B, T, n_embed)
    # bf16 MXU operands (f32 accumulation) => loosened tolerance vs f32 reference.
    assert jnp.allclose(y, y_ref, atol=2e-2, rtol=2e-2), "mismatch vs reference"

    print("KERNEL_OK")
</pallas_src>

<mosaic_0001>
module attributes {stable_mosaic.version = 11 : i64} {
  func.func @kernel(%arg0: i32, %arg1: memref<1x8x384xf32, #tpu.memory_space<vmem>>, %arg2: memref<384x384xbf16, #tpu.memory_space<vmem>>, %arg3: memref<128x384xbf16, #tpu.memory_space<vmem>>, %arg4: memref<1x384xf32, #tpu.memory_space<vmem>>, %arg5: memref<1x8x384xf32, #tpu.memory_space<vmem>>, %arg6: memref<1x8x384xbf16, #tpu.memory_space<vmem>>, %arg7: memref<1x8x128xbf16, #tpu.memory_space<vmem>>) attributes {dimension_semantics = [#tpu.dimension_semantics<parallel>], iteration_bounds = array<i64: 2>, scalar_prefetch = 0 : i64, scratch_operands = 2 : i64, tpu.core_type = #tpu.core_type<tc>, window_params = [{transform_indices = @transform_0, window_bounds = array<i64: 1, 8, 384>}, {pipeline_mode = #tpu.pipeline_mode<synchronous>, transform_indices = @transform_1, window_bounds = array<i64: 384, 384>}, {pipeline_mode = #tpu.pipeline_mode<synchronous>, transform_indices = @transform_2, window_bounds = array<i64: 128, 384>}, {pipeline_mode = #tpu.pipeline_mode<synchronous>, transform_indices = @transform_3, window_bounds = array<i64: 1, 384>}, {transform_indices = @transform_4, window_bounds = array<i64: 1, 8, 384>}]} {
    %c0 = arith.constant 0 : index
    %c0_0 = arith.constant 0 : index
    %c0_1 = arith.constant 0 : index
    %0 = vector.load %arg1[%c0, %c0_0, %c0_1] : memref<1x8x384xf32, #tpu.memory_space<vmem>>, vector<1x8x384xf32>
    %1 = vector.shape_cast %0 : vector<1x8x384xf32> to vector<8x384xf32>
    %2 = arith.truncf %1 : vector<8x384xf32> to vector<8x384xbf16>
    %c0_2 = arith.constant 0 : index
    %c0_3 = arith.constant 0 : index
    %3 = vector.load %arg2[%c0_2, %c0_3] : memref<384x384xbf16, #tpu.memory_space<vmem>>, vector<384x384xbf16>
    %cst = arith.constant dense<0.000000e+00> : vector<8x384xf32>
    %4 = tpu.matmul %2, %3, %cst {dimension_numbers = #tpu.dot_dimension_numbers<[1], [0], [0], [1], [0, 0, 1, 1], [], []>} : vector<8x384xbf16>, vector<384x384xbf16>, vector<8x384xf32> -> vector<8x384xf32>
    %5 = arith.truncf %4 : vector<8x384xf32> to vector<8x384xbf16>
    %6 = vector.shape_cast %5 : vector<8x384xbf16> to vector<1x8x384xbf16>
    %c0_4 = arith.constant 0 : index
    %c0_5 = arith.constant 0 : index
    %c0_6 = arith.constant 0 : index
    %7 = vector.load %arg6[%c0_4, %c0_5, %c0_6] : memref<1x8x384xbf16, #tpu.memory_space<vmem>>, vector<1x8x384xbf16>
    tpu.vector_store %arg6[%c0_4, %c0_5, %c0_6], %6 {strides = array<i32>} : memref<1x8x384xbf16, #tpu.memory_space<vmem>>, vector<1x8x384xbf16>,
    %8 = tpu.iota {dimensions = array<i32: 0>} : vector<8x8xi32>
    %9 = tpu.iota {dimensions = array<i32: 1>} : vector<8x8xi32>
    %10 = arith.cmpi sle, %9, %8 : vector<8x8xi32>
    %c0_7 = arith.constant 0 : index
    %c0_8 = arith.constant 0 : index
    %c0_9 = arith.constant 0 : index
    %11 = vector.load %arg6[%c0_7, %c0_8, %c0_9] : memref<1x8x384xbf16, #tpu.memory_space<vmem>>, vector<1x8x64xbf16>
    %c0_10 = arith.constant 0 : index
    %c0_11 = arith.constant 0 : index
    %c128 = arith.constant 128 : index
    %12 = vector.load %arg6[%c0_10, %c0_11, %c128] : memref<1x8x384xbf16, #tpu.memory_space<vmem>>, vector<1x8x64xbf16>
    %c0_12 = arith.constant 0 : index
    %c0_13 = arith.constant 0 : index
    %c256 = arith.constant 256 : index
    %13 = vector.load %arg6[%c0_12, %c0_13, %c256] : memref<1x8x384xbf16, #tpu.memory_space<vmem>>, vector<1x8x64xbf16>
    %cst_14 = arith.constant dense<0.000000e+00> : vector<1x8x8xf32>
    %14 = tpu.matmul %11, %12, %cst_14 {dimension_numbers = #tpu.dot_dimension_numbers<[2], [2], [1], [1], [0, 0, 0, 1, 1, 1], [0], [0]>} : vector<1x8x64xbf16>, vector<1x8x64xbf16>, vector<1x8x8xf32> -> vector<1x8x8xf32>
    %cst_15 = arith.constant 0xFF800000 : f32
    %15 = vector.shape_cast %10 : vector<8x8xi1> to vector<1x8x8xi1>
    %16 = vector.broadcast %cst_15 : f32 to vector<1x8x8xf32>
    %17 = arith.select %15, %14, %16 : vector<1x8x8xi1>, vector<1x8x8xf32>
    %cst_16 = arith.constant dense<0xFF800000> : vector<1x8xf32>
    %18 = vector.multi_reduction <maximumf>, %17, %cst_16 [2] : vector<1x8x8xf32> to vector<1x8xf32>
    %19 = vector.shape_cast %18 : vector<1x8xf32> to vector<1x8x1xf32>
    %20 = vector.broadcast %19 : vector<1x8x1xf32> to vector<1x8x8xf32>
    %21 = arith.subf %17, %20 : vector<1x8x8xf32>
    %22 = math.exp %21 : vector<1x8x8xf32>
    %cst_17 = arith.constant dense<0.000000e+00> : vector<1x8xf32>
    %23 = vector.multi_reduction <add>, %22, %cst_17 [2] : vector<1x8x8xf32> to vector<1x8xf32>
    %24 = vector.shape_cast %23 : vector<1x8xf32> to vector<1x8x1xf32>
    %25 = tpu.reciprocal %24 {approx = true} : vector<1x8x1xf32> -> vector<1x8x1xf32>
    %26 = vector.broadcast %25 : vector<1x8x1xf32> to vector<1x8x8xf32>
    %27 = arith.mulf %22, %26 : vector<1x8x8xf32>
    %28 = arith.truncf %27 : vector<1x8x8xf32> to vector<1x8x8xbf16>
    %cst_18 = arith.constant dense<0.000000e+00> : vector<1x8x64xf32>
    %29 = tpu.matmul %28, %13, %cst_18 {dimension_numbers = #tpu.dot_dimension_numbers<[2], [1], [1], [2], [0, 0, 0, 1, 1, 2], [0], [0]>} : vector<1x8x8xbf16>, vector<1x8x64xbf16>, vector<1x8x64xf32> -> vector<1x8x64xf32>
    %30 = arith.truncf %29 : vector<1x8x64xf32> to vector<1x8x64xbf16>
    %c0_19 = arith.constant 0 : index
    %c0_20 = arith.constant 0 : index
    %c0_21 = arith.constant 0 : index
    %31 = vector.load %arg7[%c0_19, %c0_20, %c0_21] : memref<1x8x128xbf16, #tpu.memory_space<vmem>>, vector<1x8x64xbf16>
    tpu.vector_store %arg7[%c0_19, %c0_20, %c0_21], %30 {strides = array<i32>} : memref<1x8x128xbf16, #tpu.memory_space<vmem>>, vector<1x8x64xbf16>,
    %c0_22 = arith.constant 0 : index
    %c0_23 = arith.constant 0 : index
    %c64 = arith.constant 64 : index
    %32 = vector.load %arg6[%c0_22, %c0_23, %c64] : memref<1x8x384xbf16, #tpu.memory_space<vmem>>, vector<1x8x64xbf16>
    %c0_24 = arith.constant 0 : index
    %c0_25 = arith.constant 0 : index
    %c192 = arith.constant 192 : index
    %33 = vector.load %arg6[%c0_24, %c0_25, %c192] : memref<1x8x384xbf16, #tpu.memory_space<vmem>>, vector<1x8x64xbf16>
    %c0_26 = arith.constant 0 : index
    %c0_27 = arith.constant 0 : index
    %c320 = arith.constant 320 : index
    %34 = vector.load %arg6[%c0_26, %c0_27, %c320] : memref<1x8x384xbf16, #tpu.memory_space<vmem>>, vector<1x8x64xbf16>
    %cst_28 = arith.constant dense<0.000000e+00> : vector<1x8x8xf32>
    %35 = tpu.matmul %32, %33, %cst_28 {dimension_numbers = #tpu.dot_dimension_numbers<[2], [2], [1], [1], [0, 0, 0, 1, 1, 1], [0], [0]>} : vector<1x8x64xbf16>, vector<1x8x64xbf16>, vector<1x8x8xf32> -> vector<1x8x8xf32>
    %cst_29 = arith.constant 0xFF800000 : f32
    %36 = vector.shape_cast %10 : vector<8x8xi1> to vector<1x8x8xi1>
    %37 = vector.broadcast %cst_29 : f32 to vector<1x8x8xf32>
    %38 = arith.select %36, %35, %37 : vector<1x8x8xi1>, vector<1x8x8xf32>
    %cst_30 = arith.constant dense<0xFF800000> : vector<1x8xf32>
    %39 = vector.multi_reduction <maximumf>, %38, %cst_30 [2] : vector<1x8x8xf32> to vector<1x8xf32>
    %40 = vector.shape_cast %39 : vector<1x8xf32> to vector<1x8x1xf32>
    %41 = vector.broadcast %40 : vector<1x8x1xf32> to vector<1x8x8xf32>
    %42 = arith.subf %38, %41 : vector<1x8x8xf32>
    %43 = math.exp %42 : vector<1x8x8xf32>
    %cst_31 = arith.constant dense<0.000000e+00> : vector<1x8xf32>
    %44 = vector.multi_reduction <add>, %43, %cst_31 [2] : vector<1x8x8xf32> to vector<1x8xf32>
    %45 = vector.shape_cast %44 : vector<1x8xf32> to vector<1x8x1xf32>
    %46 = tpu.reciprocal %45 {approx = true} : vector<1x8x1xf32> -> vector<1x8x1xf32>
    %47 = vector.broadcast %46 : vector<1x8x1xf32> to vector<1x8x8xf32>
    %48 = arith.mulf %43, %47 : vector<1x8x8xf32>
    %49 = arith.truncf %48 : vector<1x8x8xf32> to vector<1x8x8xbf16>
    %cst_32 = arith.constant dense<0.000000e+00> : vector<1x8x64xf32>
    %50 = tpu.matmul %49, %34, %cst_32 {dimension_numbers = #tpu.dot_dimension_numbers<[2], [1], [1], [2], [0, 0, 0, 1, 1, 2], [0], [0]>} : vector<1x8x8xbf16>, vector<1x8x64xbf16>, vector<1x8x64xf32> -> vector<1x8x64xf32>
    %51 = arith.truncf %50 : vector<1x8x64xf32> to vector<1x8x64xbf16>
    %c0_33 = arith.constant 0 : index
    %c0_34 = arith.constant 0 : index
    %c64_35 = arith.constant 64 : index
    %52 = vector.load %arg7[%c0_33, %c0_34, %c64_35] : memref<1x8x128xbf16, #tpu.memory_space<vmem>>, vector<1x8x64xbf16>
    tpu.vector_store %arg7[%c0_33, %c0_34, %c64_35], %51 {strides = array<i32>} : memref<1x8x128xbf16, #tpu.memory_space<vmem>>, vector<1x8x64xbf16>,
    %c0_36 = arith.constant 0 : index
    %c0_37 = arith.constant 0 : index
    %c0_38 = arith.constant 0 : index
    %53 = vector.load %arg7[%c0_36, %c0_37, %c0_38] : memref<1x8x128xbf16, #tpu.memory_space<vmem>>, vector<1x8x128xbf16>
    %54 = vector.shape_cast %53 : vector<1x8x128xbf16> to vector<8x128xbf16>
    %c0_39 = arith.constant 0 : index
    %c0_40 = arith.constant 0 : index
    %55 = vector.load %arg3[%c0_39, %c0_40] : memref<128x384xbf16, #tpu.memory_space<vmem>>, vector<128x384xbf16>
    %cst_41 = arith.constant dense<0.000000e+00> : vector<8x384xf32>
    %56 = tpu.matmul %54, %55, %cst_41 {dimension_numbers = #tpu.dot_dimension_numbers<[1], [0], [0], [1], [0, 0, 1, 1], [], []>} : vector<8x128xbf16>, vector<128x384xbf16>, vector<8x384xf32> -> vector<8x384xf32>
    %c0_42 = arith.constant 0 : index
    %c0_43 = arith.constant 0 : index
    %57 = vector.load %arg4[%c0_42, %c0_43] : memref<1x384xf32, #tpu.memory_space<vmem>>, vector<1x384xf32>
    %58 = vector.broadcast %57 : vector<1x384xf32> to vector<8x384xf32>
    %59 = arith.addf %56, %58 : vector<8x384xf32>
    %60 = vector.shape_cast %59 : vector<8x384xf32> to vector<1x8x384xf32>
    %c0_44 = arith.constant 0 : index
    %c0_45 = arith.constant 0 : index
    %c0_46 = arith.constant 0 : index
    %61 = vector.load %arg5[%c0_44, %c0_45, %c0_46] : memref<1x8x384xf32, #tpu.memory_space<vmem>>, vector<1x8x384xf32>
    tpu.vector_store %arg5[%c0_44, %c0_45, %c0_46], %60 {strides = array<i32>} : memref<1x8x384xf32, #tpu.memory_space<vmem>>, vector<1x8x384xf32>,
    return
  }
  func.func @transform_0(%arg0: i32) -> (i32, i32, i32) {
    %c0_i32 = arith.constant 0 : i32
    %c0_i32_0 = arith.constant 0 : i32
    %c0_i32_1 = arith.constant 0 : i32
    return %arg0, %c0_i32, %c0_i32_0 : i32, i32, i32
  }
  func.func @transform_1(%arg0: i32) -> (i32, i32) {
    %c0_i32 = arith.constant 0 : i32
    %c0_i32_0 = arith.constant 0 : i32
    %c0_i32_1 = arith.constant 0 : i32
    return %c0_i32, %c0_i32_0 : i32, i32
  }
  func.func @transform_2(%arg0: i32) -> (i32, i32) {
    %c0_i32 = arith.constant 0 : i32
    %c0_i32_0 = arith.constant 0 : i32
    %c0_i32_1 = arith.constant 0 : i32
    return %c0_i32, %c0_i32_0 : i32, i32
  }
  func.func @transform_3(%arg0: i32) -> (i32, i32) {
    %c0_i32 = arith.constant 0 : i32
    %c0_i32_0 = arith.constant 0 : i32
    %c0_i32_1 = arith.constant 0 : i32
    return %c0_i32, %c0_i32_0 : i32, i32
  }
  func.func @transform_4(%arg0: i32) -> (i32, i32, i32) {
    %c0_i32 = arith.constant 0 : i32
    %c0_i32_0 = arith.constant 0 : i32
    %c0_i32_1 = arith.constant 0 : i32
    return %arg0, %c0_i32, %c0_i32_0 : i32, i32, i32
  }
}

</mosaic_0001>

<bundles_post_ra>
// kernel: multi_head_attention.1
= control target key start
LH: loop header
LB: loop body
LE: loop exit
PB: predicated region body
PF: predicated region fallthrough
CT: control target
= control target key end

     0   :  { %9 = vsyncpa [#allocation5], 0  ;;  %s2469_s0 = inlined_call_operand.hbm [shape: f32[2,8,384], index: 0, kind: input, shape index: {}]   ;;  %s2470_s1 = inlined_call_operand.hbm [shape: bf16[384,384], index: 1, kind: input, shape index: {}]   ;;  %s2471_s2 = inlined_call_operand.hbm [shape: bf16[128,384], index: 2, kind: input, shape index: {}]   ;;  %s2472_s3 = inlined_call_operand.vmem [shape: f32[1,384], index: 3, kind: input, shape index: {}]   ;;  %s2473_s4 = inlined_call_operand.hbm [shape: f32[2,8,384], index: 4, kind: output, shape index: {}]  }
   0x1   :  { %11 = vsyncpa [#allocation5 + $0x1], 0 }
   0x2   :  { %12 = vsyncpa [#allocation8], 0 }
   0x3   :  { %13 = vsyncpa [#allocation6], 0 }
   0x4   :  { %15 = vsyncpa [#allocation6 + $0x1], 0  ;;  %s2170_s15 = smov 0   ;;  %s2172_s16 = smov 0  }
   0x5   :  { %s2174_s17 = smov 0   ;;  %s2176_s18 = smov 0  }
   0x6 LB: > { %s2191_s19 = sadd.s32 4294967295, %s2133_s18   ;;  %s1524_s20 = sadd.s32 4294967294, %s2133_s18   ;;  %s2133_s18 = sphi %s2176_s18, %s2493_s18   ;;  %s2129_s17 = sphi %s2174_s17, %s2492_s17   ;;  %s2125_s16 = sphi %s2172_s16, %s2491_s16   ;;  %s2121_s15 = sphi %s2170_s15, %s2490_s15  }
   0x7   : > { %p41_p0 = scmp.ne.s32.totalorder %s2125_s16, %s2121_s15  ;;  %p2474_p1 = scmp.eq.s32.totalorder %s2191_s19, 0 }
   0x8   : > { %p134_p3 = scmp.eq.s32.totalorder %s1524_s20, 1  ;;  %p1525_p5 = scmp.ge.s32.totalorder %s2133_s18, 1 }
   0x9   : > { %p2200_p4 = por %p2474_p1, %p41_p0  ;;  %p141_p7 = scmp.lt.s32.totalorder %s2133_s18, 3 }
   0xa   : > { %p2205_p6 = por %p134_p3, %p41_p0  ;;  %s2135_s24 = smov [#allocation7]  }
   0xb   : > { %s2477_s21 = scalar_select %p2200_p4, 1, 0 }
   0xc   : > { %s2478_s22 = scalar_select %p2205_p6, 1, 0 }
   0xd   : > { %p2210_p8 = pnand %p1525_p5, %p141_p7  ;;  %s153_s25 = sshll.u32 %s2135_s24, 4  ;;  %s2214_s25 = int_to_ptr.vmem [resolvable:$true] %s153_s25 }
   0xe   : > { %s2136_s27 = smov [#allocation9]   ;;  %s1977_s5 = scalar_lea.hbm %s2470_s1, 9216 }
   0xf   : > { %p1777_p9 = pneg %p2210_p8  ;;  %s166_s28 = sshll.u32 %s2136_s27, 4  ;;  %s2225_s28 = int_to_ptr.vmem [resolvable:$true] %s166_s28 }
  0x10   : > { %p1978_p12 = scmp.ne.s32.totalorder %s2470_s1, %s1977_s5  ;;  %p1984_p5 = scmp.lt.u32.totalorder %s1977_s5, %s2470_s1 }
  0x11   : > { %p2221_p11 = pnand %p1777_p9, %p2474_p1 }
  0x13   : > { %p1979_p13 = pneg %p2221_p11 }
  0x15   : > { %p1980_p0 = pnand %p1979_p13, %p1978_p12 }
  0x17   : > { %p1981_p3 = pneg %p1980_p0 }
  0x19   : > { %p1986_p7 = pnand %p1984_p5, %p1981_p3 }
  0x1b   : > { %1989 = shalt.err (!%p1986_p7)
}
  0x1c   : > { %s1990_s10 = scalar_lea.vmem %s2214_s25, 9216  ;;  %p1998_p2 = scmp.lt.s32.totalorder %s2214_s25, %s2214_s25 }
  0x1d   : > { %p1991_p9 = scmp.ne.s32.totalorder %s2214_s25, %s1990_s10  ;;  %p1999_p12 = scmp.lt.s32.totalorder %s1990_s10, %s1990_s10 }
  0x1f   : > { %p1993_p10 = pnand %p1991_p9, %p1979_p13  ;;  %p2000_p0 = por %p1999_p12, %p1998_p2 }
  0x21   : > { %p1994_p1 = pneg %p1993_p10 }
  0x23   : > { %p2001_p6 = pnand %p2000_p0, %p1994_p1 }
  0x25   : > { %2004 = shalt.err (!%p2001_p6)
}
  0x26   : > { %s2137_s11 = smov 192   ;;  %s2138_s12 = smov 12  }
  0x27   : > { %1780 = dma.hbm_to_vmem [thread:$0]  (!%p2221_p11), %s2470_s1, 9216, %s2214_s25, [#allocation8], %s2137_s11, %s2137_s11, %s2138_s12  }
  0x28   : > { %s2005_s27 = scalar_lea.hbm %s2471_s2, 3072 }
  0x29   : > { %p2006_p2 = scmp.ne.s32.totalorder %s2471_s2, %s2005_s27  ;;  %p2012_p10 = scmp.lt.u32.totalorder %s2005_s27, %s2471_s2 }
  0x2b   : > { %p2008_p1 = pnand %p2006_p2, %p1979_p13 }
  0x2d   : > { %p2009_p6 = pneg %p2008_p1 }
  0x2f   : > { %p2014_p3 = pnand %p2012_p10, %p2009_p6 }
  0x31   : > { %2017 = shalt.err (!%p2014_p3)
}
  0x32   : > { %s2018_s25 = scalar_lea.vmem %s2225_s28, 3072  ;;  %p2026_p12 = scmp.lt.s32.totalorder %s2225_s28, %s2225_s28 }
  0x33   : > { %p2019_p5 = scmp.ne.s32.totalorder %s2225_s28, %s2018_s25  ;;  %p2027_p0 = scmp.lt.s32.totalorder %s2018_s25, %s2018_s25 }
  0x35   : > { %p2021_p7 = pnand %p2019_p5, %p1979_p13  ;;  %p2028_p2 = por %p2027_p0, %p2026_p12 }
  0x37   : > { %p2022_p9 = pneg %p2021_p7 }
  0x39   : > { %p2029_p1 = pnand %p2028_p2, %p2022_p9 }
  0x3b   : > { %2032 = shalt.err (!%p2029_p1)
}
  0x3c   : > { %1783 = dma.hbm_to_vmem [thread:$0]  (!%p2221_p11), %s2471_s2, 3072, %s2225_s28, [#allocation8], %s2137_s11, %s2137_s11, %s2138_s12  }
  0x3d   : > { %s2280_s9 = sadd.s32 1, %s2133_s18   ;;  %s28_s26 = sadd.s32 1, %s2129_s17 }
  0x3e   : > { %s25_s10 = ssub.s32 %s2133_s18, %s2280_s9  ;;  %p35_p13 = scmp.ne.s32.totalorder %s2129_s17, %s2125_s16 }
  0x3f   : > { %p26_p6 = scmp.eq.s32.totalorder %s25_s10, 0  ;;  %p36_p10 = scmp.eq.s32.totalorder %s2133_s18, 0 }
  0x40   : > { %p2481_p3 = scmp.eq.s32.totalorder %s2191_s19, 1  ;;  %p1794_p7 = scmp.lt.s32.totalorder %s2133_s18, 2 }
  0x41   : > { %s2296_s14 = scalar_select %p26_p6, %s2129_s17, %s28_s26  }
  0x42   : > { %p2290_p5 = por %p2481_p3, %p35_p13  ;;  %p37_p9 = por %p36_p10, %p35_p13 }
  0x43   : > { %s183_s20 = sand.u32 1, %s2129_s17   ;;  %s1762_s28 = smul.u32 384, %s2133_s18 }
  0x44   : > { %s2482_s13 = scalar_select %p2290_p5, 1, 0 }
  0x45   : > { %s1761_s24 = smul.u32 24, %s183_s20  ;;  %p2300_p11 = pnand %p1794_p7, %p37_p9 }
  0x46   : > { %s2307_s29 = scalar_lea.hbm %s2469_s0, %s1762_s28  ;;  %s184_s6 = scalar_lea.sflag [#allocation5], %s183_s20 }
  0x47   : > { %s187_s30 = scalar_lea.vmem [#allocation4], %s1761_s24  ;;  %s2033_s25 = scalar_lea.hbm %s2307_s29, 384 }
  0x48   : > { %s195_s5 = sshll.u32 %s187_s30, 4  ;;  %p2034_p12 = scmp.ne.s32.totalorder %s2307_s29, %s2033_s25  ;;  %s2309_s5 = int_to_ptr.vmem [resolvable:$true] %s195_s5 }
  0x49   : > { %p2035_p0 = pneg %p2300_p11  ;;  %s2038_s26 = scalar_lea.hbm %s2469_s0, 768 }
  0x4a   : > { %p2039_p13 = scmp.lt.u32.totalorder %s2307_s29, %s2469_s0  ;;  %p2040_p6 = scmp.lt.u32.totalorder %s2038_s26, %s2033_s25 }
  0x4b   : > { %p2036_p2 = pnand %p2035_p0, %p2034_p12  ;;  %p2042_p3 = scmp.lt.u32.totalorder %s2033_s25, %s2307_s29 }
  0x4c   : > { %p2041_p10 = por %p2040_p6, %p2039_p13 }
  0x4d   : > { %p2037_p1 = pneg %p2036_p2 }
  0x4e   : > { %p2043_p7 = por %p2042_p3, %p2041_p10 }
  0x50   : > { %p2044_p9 = pnand %p2043_p7, %p2037_p1 }
  0x52   : > { %2047 = shalt.err (!%p2044_p9)
}
  0x53   : > { %s2048_s20 = scalar_lea.vmem %s2309_s5, 384  ;;  %s2139_s24 = smov [#allocation4]  }
  0x54   : > { %p2049_p12 = scmp.ne.s32.totalorder %s2309_s5, %s2048_s20  ;;  %s2053_s12 = sshll.u32 %s2139_s24, 4  ;;  %s2054_s12 = int_to_ptr.vmem [resolvable:$false] %s2053_s12 }
  0x55   : > { %s2055_s27 = scalar_lea.vmem %s2054_s12, 768  ;;  %p2056_p4 = scmp.lt.s32.totalorder %s2309_s5, %s2054_s12 }
  0x56   : > { %p2051_p2 = pnand %p2049_p12, %p2035_p0  ;;  %p2057_p13 = scmp.lt.s32.totalorder %s2055_s27, %s2048_s20 }
  0x58   : > { %p2052_p5 = pneg %p2051_p2  ;;  %p2058_p6 = por %p2057_p13, %p2056_p4 }
  0x5a   : > { %p2059_p10 = pnand %p2058_p6, %p2052_p5 }
  0x5c   : > { %2062 = shalt.err (!%p2059_p10)
}
  0x5d   : > { %1787 = dma.hbm_to_vmem [thread:$0]  (!%p2300_p11), %s2307_s29, 384, %s2309_s5, %s184_s6  }
  0x5e   : > { %204 = sbr.rel (%p2210_p8) target bundleno = 2065 (0x811), region = 36  ;;  %s2339_s30 = sand.u32 (!%p2210_p8), 1, %s2125_s16  }
  0x5f   : > { %s1763_s25 = smul.u32 (!%p2210_p8), 24, %s2339_s30  ;;  %s207_s7 = scalar_lea.sflag (!%p2210_p8), [#allocation5], %s2339_s30 }
  0x60   : > { %p2484_p4 = scmp.ne.s32.totalorder (!%p2210_p8), %s2477_s21, 0 }
  0x61   : > { %s2345_s8 = scalar_lea.vmem (!%p2210_p8), [#allocation4], %s1763_s25 }
  0x65   : > { %2108 = dma.done.wait (%p2484_p4), %s207_s7, 384  }
  0x66   : > { %2110 = vsyncadd (%p2484_p4), %s207_s7, 4294966912  ;;  %p2485_p5 = scmp.eq.s32.totalorder %s2191_s19, 0 }
  0x68   : > { %2112 = dma.done.wait (%p2485_p5), [#allocation8], 12288   ;;  %p2486_p8 = pmov %p2485_p5 }
  0x69   : > { %v1838_v0 = vld [vmem:[#allocation7 + $0x4] ss:$12 sps:$4 sm:$0xff]   ;;  %v1840_v1 = vld [vmem:[#allocation7] ss:$12 sps:$4 sm:$0xff]   ;;  %v1841_v2 = vld [vmem:[#allocation7 + $0x1c] ss:$12 sps:$4 sm:$0xff]  }
  0x6a   : > { %2114 = vsyncadd (%p2486_p8), [#allocation8], 4294955008  ;;  %730 = vmatprep.subr.bf16.mxu0 %v1838_v0  ;;  %v1843_v3 = vld [vmem:[#allocation7 + $0x18] ss:$12 sps:$4 sm:$0xff]   ;;  %v1844_v4 = vld [vmem:[#allocation7 + $0x34] ss:$12 sps:$4 sm:$0xff]  }
  0x6b   : > { %731 = vmatpush1.bf16.msra.mxu0 %v1840_v1  ;;  %v1846_v5 = vld [vmem:[#allocation7 + $0x30] ss:$12 sps:$4 sm:$0xff]   ;;  %v1847_v6 = vld [vmem:[#allocation7 + $0x4c] ss:$12 sps:$4 sm:$0xff]   ;;  %v1849_v7 = vld [vmem:[#allocation7 + $0x48] ss:$12 sps:$4 sm:$0xff]  }
  0x6c   : > { %732 = vmatprep.subr.bf16.mxu0 %v1841_v2  ;;  %v1850_v8 = vld [vmem:[#allocation7 + $0x64] ss:$12 sps:$4 sm:$0xff]   ;;  %v1852_v9 = vld [vmem:[#allocation7 + $0x60] ss:$12 sps:$4 sm:$0xff]   ;;  %v1853_v10 = vld [vmem:[#allocation7 + $0x7c] ss:$12 sps:$4 sm:$0xff]  }
  0x6d   : > { %v1855_v11 = vld [vmem:[#allocation7 + $0x78] ss:$12 sps:$4 sm:$0xff]   ;;  %v1856_v12 = vld [vmem:[#allocation7 + $0x94] ss:$12 sps:$4 sm:$0xff]   ;;  %v1858_v15 = vld [vmem:[#allocation7 + $0x90] ss:$12 sps:$4 sm:$0xff]  }
  0x6e   : > { %v245_v13 = vld [vmem:[%s2345_s8 + $0x8] sm:$0xff]  ;;  %v1864_v19 = vld [vmem:[#allocation7 + $0xc0] ss:$12 sps:$4 sm:$0xff]   ;;  %v2140_v56 = vmov 0.0   ;;  %v2141_v58 = vmov 0   ;;  %vm2142_vm0 = vmmov 0  }
  0x6f   : > { %733 = vmatpush1.bf16.msra.mxu0 %v1843_v3  ;;  %v248_v14 = vpack.c.bf16 %v245_v13, %v245_v13  ;;  %v1859_v16 = vld [vmem:[#allocation7 + $0xac] ss:$12 sps:$4 sm:$0xff]   ;;  %v1861_v17 = vld [vmem:[#allocation7 + $0xa8] ss:$12 sps:$4 sm:$0xff]   ;;  %v1862_v18 = vld [vmem:[#allocation7 + $0xc4] ss:$12 sps:$4 sm:$0xff]  }
  0x70   : > { %734 = vmatprep.subr.bf16.mxu0 %v1844_v4  ;;  %v1865_v20 = vld [vmem:[#allocation7 + $0xdc] ss:$12 sps:$4 sm:$0xff]   ;;  %v1867_v21 = vld [vmem:[#allocation7 + $0xd8] ss:$12 sps:$4 sm:$0xff]   ;;  %v1868_v23 = vld [vmem:[#allocation7 + $0xf4] ss:$12 sps:$4 sm:$0xff]  }
  0x71   : > { %762 = vmatprep.mubr.bf16.mxu0 %v248_v14  ;;  %844 = vmatprep.mubr.bf16.mxu1 %v248_v14  ;;  %v1910_v22 = vld [vmem:[#allocation7 + $0xc8] ss:$12 sps:$4 sm:$0xff]   ;;  %v1912_v25 = vld [vmem:[#allocation7 + $0xe0] ss:$12 sps:$4 sm:$0xff]   ;;  %v1914_v27 = vld [vmem:[#allocation7 + $0xf8] ss:$12 sps:$4 sm:$0xff]  }
  0x72   : > { %v1911_v24 = vld [vmem:[#allocation7 + $0x8] ss:$12 sps:$4 sm:$0xff]   ;;  %1645 = vmatprep.subr.bf16.mxu1 %v1910_v22  ;;  %v1913_v26 = vld [vmem:[#allocation7 + $0x20] ss:$12 sps:$4 sm:$0xff]   ;;  %v1870_v28 = vld [vmem:[#allocation7 + $0xf0] ss:$12 sps:$4 sm:$0xff]  }
  0x73   : > { %735 = vmatpush1.bf16.msra.mxu0 %v1846_v5  ;;  %1646 = vmatpush3.bf16.msra.mxu1 %v1911_v24  ;;  %v1871_v29 = vld [vmem:[#allocation7 + $0x10c] ss:$12 sps:$4 sm:$0xff]   ;;  %v1916_v31 = vld [vmem:[#allocation7 + $0x110] ss:$12 sps:$4 sm:$0xff]   ;;  %v1873_v32 = vld [vmem:[#allocation7 + $0x108] ss:$12 sps:$4 sm:$0xff]  }
  0x74   : > { %736 = vmatprep.subr.bf16.mxu0 %v1847_v6  ;;  %1647 = vmatprep.subr.bf16.mxu1 %v1912_v25  ;;  %v1915_v30 = vld [vmem:[#allocation7 + $0x38] ss:$12 sps:$4 sm:$0xff]   ;;  %v1917_v34 = vld [vmem:[#allocation7 + $0x50] ss:$12 sps:$4 sm:$0xff]   ;;  %v1918_v35 = vld [vmem:[#allocation7 + $0x128] ss:$12 sps:$4 sm:$0xff]  }
  0x75   : > { %v1874_v33 = vld [vmem:[#allocation7 + $0x124] ss:$12 sps:$4 sm:$0xff]   ;;  %v1876_v36 = vld [vmem:[#allocation7 + $0x120] ss:$12 sps:$4 sm:$0xff]   ;;  %v1877_v37 = vld [vmem:[#allocation7 + $0x13c] ss:$12 sps:$4 sm:$0xff]  }
  0x76   : > { %v1919_v38 = vld [vmem:[#allocation7 + $0x68] ss:$12 sps:$4 sm:$0xff]   ;;  %v1920_v39 = vld [vmem:[#allocation7 + $0x140] ss:$12 sps:$4 sm:$0xff]   ;;  %v1879_v40 = vld [vmem:[#allocation7 + $0x138] ss:$12 sps:$4 sm:$0xff]  }
  0x77   : > { %737 = vmatpush1.bf16.msra.mxu0 %v1849_v7  ;;  %1648 = vmatpush3.bf16.msra.mxu1 %v1913_v26  ;;  %v1880_v41 = vld [vmem:[#allocation7 + $0x154] ss:$12 sps:$4 sm:$0xff]   ;;  %v1882_v43 = vld [vmem:[#allocation7 + $0x150] ss:$12 sps:$4 sm:$0xff]   ;;  %v1922_v44 = vld [vmem:[#allocation7 + $0x158] ss:$12 sps:$4 sm:$0xff]  }
  0x78   : > { %738 = vmatprep.subr.bf16.mxu0 %v1850_v8  ;;  %1649 = vmatprep.subr.bf16.mxu1 %v1914_v27  ;;  %v1921_v42 = vld [vmem:[#allocation7 + $0x80] ss:$12 sps:$4 sm:$0xff]   ;;  %v1923_v46 = vld [vmem:[#allocation7 + $0x98] ss:$12 sps:$4 sm:$0xff]   ;;  %v1924_v47 = vld [vmem:[#allocation7 + $0x170] ss:$12 sps:$4 sm:$0xff]  }
  0x79   : > { %v1883_v45 = vld [vmem:[#allocation7 + $0x16c] ss:$12 sps:$4 sm:$0xff]   ;;  %v1885_v48 = vld [vmem:[#allocation7 + $0x168] ss:$12 sps:$4 sm:$0xff]   ;;  %v1888_v50 = vld [vmem:[#allocation7 + $0x184] ss:$12 sps:$4 sm:$0xff]  }
  0x7a   : > { %v244_v49 = vld [vmem:[%s2345_s8] sm:$0xff]  ;;  %v1889_v57 = vld [vmem:[#allocation7 + $0x198] ss:$12 sps:$4 sm:$0xff]   ;;  %vm915_vm1 = vcmask 523264   ;;  %s2143_s21 = smov 64   ;;  %vm979_vm2 = vcmask 1043456  }
  0x7b   : > { %739 = vmatpush1.bf16.msra.mxu0 %v1852_v9  ;;  %1650 = vmatpush3.bf16.msra.mxu1 %v1915_v30  ;;  %v1925_v51 = vld [vmem:[#allocation7 + $0xb0] ss:$12 sps:$4 sm:$0xff]   ;;  %v1886_v52 = vld [vmem:[#allocation7 + $0x180] ss:$12 sps:$4 sm:$0xff]   ;;  %v247_v53 = vpack.c.bf16 %v244_v49, %v244_v49  ;;  %v1926_v55 = vld [vmem:[#allocation7 + $0x188] ss:$12 sps:$4 sm:$0xff]  }
  0x7c   : > { %740 = vmatprep.subr.bf16.mxu0 %v1853_v10  ;;  %1651 = vmatprep.subr.bf16.mxu1 %v1916_v31  ;;  %v1891_v54 = vld [vmem:[#allocation7 + $0x19c] ss:$12 sps:$4 sm:$0xff]   ;;  %v1894_v59 = vld [vmem:[#allocation7 + $0x1b4] ss:$12 sps:$4 sm:$0xff]   ;;  %v1897_v62 = vld [vmem:[#allocation7 + $0x1cc] ss:$12 sps:$4 sm:$0xff]  }
  0x7d   : > { %v1927_v60 = vld [vmem:[#allocation7 + $0x1a0] ss:$12 sps:$4 sm:$0xff]   ;;  %v1892_v61 = vld [vmem:[#allocation7 + $0x1b0] ss:$12 sps:$4 sm:$0xff]   ;;  %v1928_v63 = vld [vmem:[#allocation7 + $0x1b8] ss:$12 sps:$4 sm:$0xff]  }
  0x7e   : > { %v1895_v0 = vld [vmem:[#allocation7 + $0x1c8] ss:$12 sps:$4 sm:$0xff]   ;;  %v1900_v1 = vld [vmem:[#allocation7 + $0x1e4] ss:$12 sps:$4 sm:$0xff]   ;;  %v1898_v3 = vld [vmem:[#allocation7 + $0x1e0] ss:$12 sps:$4 sm:$0xff]  }
  0x7f   : > { %741 = vmatpush1.bf16.msra.mxu0 %v1855_v11  ;;  %1652 = vmatpush3.bf16.msra.mxu1 %v1917_v34  ;;  %v1929_v2 = vld [vmem:[#allocation7 + $0x1d0] ss:$12 sps:$4 sm:$0xff]   ;;  %v1930_v5 = vld [vmem:[#allocation7 + $0x1e8] ss:$12 sps:$4 sm:$0xff]   ;;  %v1901_v6 = vld [vmem:[#allocation7 + $0x1f8] ss:$12 sps:$4 sm:$0xff]  }
  0x80   : > { %742 = vmatprep.subr.bf16.mxu0 %v1856_v12  ;;  %1653 = vmatprep.subr.bf16.mxu1 %v1918_v35  ;;  %v1903_v4 = vld [vmem:[#allocation7 + $0x1fc] ss:$12 sps:$4 sm:$0xff]   ;;  %v1906_v7 = vld [vmem:[#allocation7 + $0x214] ss:$12 sps:$4 sm:$0xff]   ;;  %v1909_v10 = vld [vmem:[#allocation7 + $0x22c] ss:$12 sps:$4 sm:$0xff]  }
  0x81   : > { %v1931_v8 = vld [vmem:[#allocation7 + $0x200] ss:$12 sps:$4 sm:$0xff]   ;;  %v1904_v9 = vld [vmem:[#allocation7 + $0x210] ss:$12 sps:$4 sm:$0xff]   ;;  %v1932_v11 = vld [vmem:[#allocation7 + $0x218] ss:$12 sps:$4 sm:$0xff]  }
  0x82   : > { %v1907_v12 = vld [vmem:[#allocation7 + $0x228] ss:$12 sps:$4 sm:$0xff]   ;;  %v246_v13 = vld [vmem:[%s2345_s8 + $0x10] sm:$0xff]  ;;  %vm963_vm4 = vcmask 64512   ;;  %vm1024_vm5 = vcmask 519168   ;;  %vm1156_vm6 = vcmask 1043968  }
  0x83   : > { %743 = vmatpush1.bf16.msra.mxu0 %v1858_v15  ;;  %1654 = vmatpush3.bf16.msra.mxu1 %v1919_v38  ;;  %v1933_v14 = vld [vmem:[#allocation7 + $0x230] ss:$12 sps:$4 sm:$0xff]   ;;  %v249_v15 = vpack.c.bf16 %v246_v13, %v246_v13  ;;  %s1764_s29 = smul.u32 384, %s2191_s19  ;;  %s242_s5 = scalar_lea.vmem [#allocation10], %s1763_s25 }
  0x84   : > { %744 = vmatprep.subr.bf16.mxu0 %v1859_v16  ;;  %1655 = vmatprep.subr.bf16.mxu1 %v1920_v39  ;;  %v907_v39 = vlaneseq  ;;  %s1435_s6 = sshll.u32 %s242_s5, 4  ;;  %s1421_s19 = scalar_lea.sflag [#allocation6], %s2339_s30  ;;  %s2427_s6 = int_to_ptr.vmem [resolvable:$true] %s1435_s6 }
  0x85   : > { %s2425_s28 = scalar_lea.hbm %s2473_s4, %s1764_s29  ;;  %s2063_s20 = scalar_lea.vmem %s2427_s6, 384 }
  0x86   : > { %p2064_p11 = scmp.ne.s32.totalorder %s2427_s6, %s2063_s20  ;;  %p2487_p0 = scmp.ne.s32.totalorder %s2482_s13, 0 }
  0x87   : > { %745 = vmatpush1.bf16.msra.mxu0 %v1861_v17  ;;  %1656 = vmatpush3.bf16.msra.mxu1 %v1921_v42  ;;  %s2144_s24 = smov [#allocation10]  }
  0x88   : > { %746 = vmatprep.subr.bf16.mxu0 %v1862_v18  ;;  %1657 = vmatprep.subr.bf16.mxu1 %v1922_v44  ;;  %p2065_p1 = pnand %p2064_p11, %p2487_p0  ;;  %s2067_s12 = sshll.u32 %s2144_s24, 4  ;;  %s2068_s12 = int_to_ptr.vmem [resolvable:$false] %s2067_s12 }
  0x89   : > { %s2069_s27 = scalar_lea.vmem %s2068_s12, 768  ;;  %p2070_p7 = scmp.lt.s32.totalorder %s2427_s6, %s2068_s12 }
  0x8a   : > { %p2066_p3 = pneg %p2065_p1  ;;  %p2071_p9 = scmp.lt.s32.totalorder %s2069_s27, %s2063_s20 }
  0x8b   : > { %747 = vmatpush1.bf16.msra.mxu0 %v1864_v19  ;;  %1658 = vmatpush3.bf16.msra.mxu1 %v1923_v46 }
  0x8c   : > { %748 = vmatprep.subr.bf16.mxu0 %v1865_v20  ;;  %1659 = vmatprep.subr.bf16.mxu1 %v1924_v47  ;;  %p2072_p12 = por %p2071_p9, %p2070_p7 }
  0x8e   : > { %p2073_p2 = pnand %p2072_p12, %p2066_p3 }
  0x8f   : > { %749 = vmatpush1.bf16.msra.mxu0 %v1867_v21  ;;  %1660 = vmatpush3.bf16.msra.mxu1 %v1925_v51 }
  0x90   : > { %750 = vmatprep.subr.bf16.mxu0 %v1868_v23  ;;  %1693 = vmatprep.subr.bf16.mxu1 %v2140_v56 }
  0x92   : > { %845 = vmatmul.mubr.bf16.vlgmr.msra.gmra.mrb[0].mxu1 %v247_v53 }
  0x93   : > { %751 = vmatpush1.bf16.msra.mxu0 %v1870_v28  ;;  %1694 = vmatpush3.bf16.msra.mxu1 %v1926_v55 }
  0x94   : > { %752 = vmatprep.subr.bf16.mxu0 %v1871_v29  ;;  %1709 = vmatprep.mubr.msk.bf16.mxu1 %vm2142_vm0, %v2140_v56 }
  0x95   : > { %1695 = vmatprep.subr.bf16.mxu1 %v2140_v56 }
  0x97   : > { %753 = vmatpush1.bf16.msra.mxu0 %v1873_v32  ;;  %1696 = vmatpush3.bf16.msra.mxu1 %v1927_v60 }
  0x98   : > { %754 = vmatprep.subr.bf16.mxu0 %v1874_v33  ;;  %1697 = vmatprep.subr.bf16.mxu1 %v2140_v56 }
  0x9b   : > { %755 = vmatpush1.bf16.msra.mxu0 %v1876_v36  ;;  %1698 = vmatpush3.bf16.msra.mxu1 %v1928_v63 }
  0x9c   : > { %756 = vmatprep.subr.bf16.mxu0 %v1877_v37  ;;  %1699 = vmatprep.subr.bf16.mxu1 %v2140_v56 }
  0x9f   : > { %757 = vmatpush1.bf16.msra.mxu0 %v1879_v40  ;;  %1700 = vmatpush3.bf16.msra.mxu1 %v1929_v2  ;;  %v2380_v40 = vshrl.u32 %v907_v39, 7 }
  0xa0   : > { %758 = vmatprep.subr.bf16.mxu0 %v1880_v41  ;;  %1701 = vmatprep.subr.bf16.mxu1 %v2140_v56  ;;  %v910_v41 = vand.u32 127, %v907_v39  ;;  %v1963_v39 = vld [vmem:[#allocation9 + $0x94] ss:$12 sps:$4 sm:$0xff]  }
  0xa2   : > { %vm911_vm3 = vcmp.le.s32.totalorder %v910_v41, %v2380_v40  ;;  %v1964_v41 = vld [vmem:[#allocation9 + $0x98] ss:$12 sps:$4 sm:$0xff]  }
  0xa3   : > { %759 = vmatpush1.bf16.msra.mxu0 %v1882_v43  ;;  %1702 = vmatpush3.bf16.msra.mxu1 %v1930_v5 }
  0xa4   : > { %760 = vmatprep.subr.bf16.mxu0 %v1883_v45  ;;  %1703 = vmatprep.subr.bf16.mxu1 %v2140_v56 }
  0xa7   : > { %761 = vmatpush1.bf16.msra.mxu0 %v1885_v48  ;;  %1704 = vmatpush3.bf16.msra.mxu1 %v1931_v8 }
  0xa8   : > { %771 = vmatprep.subr.bf16.mxu0 %v1888_v50  ;;  %1705 = vmatprep.subr.bf16.mxu1 %v2140_v56 }
  0xaa   : > { %763 = vmatmul.mubr.bf16.vlgmr.msra.gmra.mrb[0].mxu0 %v247_v53 }
  0xab   : > { %772 = vmatpush1.bf16.msra.mxu0 %v1886_v52  ;;  %803 = vmatprep.mubr.bf16.mxu0 %v2141_v58 }
  0xac   : > { %773 = vmatprep.subr.bf16.mxu0 %v1891_v54  ;;  %1706 = vmatpush3.bf16.msra.mxu1 %v1932_v11 }
  0xad   : > { %1707 = vmatprep.subr.bf16.mxu1 %v2140_v56 }
  0xaf   : > { %774 = vmatpush1.bf16.msra.mxu0 %v1889_v57 }
  0xb0   : > { %775 = vmatprep.subr.bf16.mxu0 %v1894_v59  ;;  %1708 = vmatpush3.bf16.msra.mxu1 %v1933_v14 }
  0xb1   : > { %1713 = vmatprep.subr.bf16.mxu1 %v2140_v56 }
  0xb3   : > { %776 = vmatpush1.bf16.msra.mxu0 %v1892_v61  ;;  %1710 = vmatmul.mubr.bf16.vlgmr.msra.gmra.mrb[4].mxu1 %v249_v15 }
  0xb4   : > { %777 = vmatprep.subr.bf16.mxu0 %v1897_v62  ;;  %1715 = vmatprep.mubr.msk.bf16.mxu1 %vm2142_vm0, %v2140_v56 }
  0xb7   : > { %778 = vmatpush1.bf16.msra.mxu0 %v1895_v0 }
  0xb8   : > { %779 = vmatprep.subr.bf16.mxu0 %v1900_v1 }
  0xbb   : > { %780 = vmatpush1.bf16.msra.mxu0 %v1898_v3 }
  0xbc   : > { %781 = vmatprep.subr.bf16.mxu0 %v1903_v4 }
  0xbf   : > { %782 = vmatpush1.bf16.msra.mxu0 %v1901_v6 }
  0xc0   : > { %783 = vmatprep.subr.bf16.mxu0 %v1906_v7 }
  0xc3   : > { %784 = vmatpush1.bf16.msra.mxu0 %v1904_v9 }
  0xc4   : > { %785 = vmatprep.subr.bf16.mxu0 %v1909_v10 }
  0xc7   : > { %786 = vmatpush1.bf16.msra.mxu0 %v1907_v12 }
  0xca   : > { %804 = vmatmul.mubr.bf16.vlgmr.msra.gmra.mrb[0].mxu0 %v249_v15 }
  0xcb   : > { %1368 = vmatprep.mubr.bf16.mxu0 %v2141_v58 }
 0x165   : > { %v1661_v21 = vpop.f32.mrb[0].mxu1 }
 0x166   : > { %v1662_v22 = vpop.f32.mrb[1].mxu1 }
 0x167   : > { %v1663_v23 = vadd.f32 %v1662_v22, %v1661_v21  ;;  %v1664_v24 = vpop.f32.mrb[2].mxu1  ;;  %v1939_v21 = vld [vmem:[#allocation9 + $0x4] ss:$12 sps:$4 sm:$0xff]   ;;  %v1940_v22 = vld [vmem:[#allocation9 + $0x8] ss:$12 sps:$4 sm:$0xff]  }
 0x168   : > { %v1665_v25 = vpop.f32.mrb[3].mxu1  ;;  %1336 = vmatprep.subr.bf16.mxu0 %v1939_v21  ;;  %v1944_v24 = vld [vmem:[#allocation9 + $0x20] ss:$12 sps:$4 sm:$0xff]  }
 0x169   : > { %v1941_v25 = vld [vmem:[#allocation9 + $0x18] ss:$12 sps:$4 sm:$0xff]  }
 0x186   : > { %v886_v26 = vpop.f32.mrb[4].mxu1 }
 0x187   : > { %v887_v27 = vadd.f32 %v1663_v23, %v886_v26  ;;  %v1711_v28 = vpop.f32.mrb[5].mxu1  ;;  %v1943_v23 = vld [vmem:[#allocation9 + $0x1c] ss:$12 sps:$4 sm:$0xff]   ;;  %v1947_v26 = vld [vmem:[#allocation9 + $0x34] ss:$12 sps:$4 sm:$0xff]  }
 0x188   : > { %v889_v29 = vpop.f32.mrb[6].mxu1  ;;  %v1945_v28 = vld [vmem:[#allocation9 + $0x30] ss:$12 sps:$4 sm:$0xff]  }
 0x189   : > { %v1643_v30 = vpack.c.bf16 %v887_v27, %v887_v27  ;;  %v1712_v31 = vpop.f32.mrb[7].mxu1  ;;  %v1948_v27 = vld [vmem:[#allocation9 + $0x38] ss:$12 sps:$4 sm:$0xff]  }
 0x18a   : > { %v1951_v29 = vld [vmem:[#allocation9 + $0x4c] ss:$12 sps:$4 sm:$0xff]   ;;  %v1949_v31 = vld [vmem:[#allocation9 + $0x48] ss:$12 sps:$4 sm:$0xff]  }
 0x18b   : > { %906 = vst [vmem:[#allocation2 + $0x8] sm:$0xf] %v1643_v30  ;;  %v1952_v30 = vld [vmem:[#allocation9 + $0x50] ss:$12 sps:$4 sm:$0xff]  }
 0x192   : > { %v914_v37 = vld [vmem:[#allocation2 + $0x8] sm:$0xf] }
 0x193   : > { %v981_v38 = vsel %vm979_vm2, %v914_v37, 0  ;;  %v1936_v8 = vld [vmem:[#allocation2 + $0x8] ss:$0 sps:$4 sm:$0xff]   ;;  %v1957_v37 = vld [vmem:[#allocation9 + $0x78] ss:$12 sps:$4 sm:$0xff]  }
 0x19d   : > { %v805_v16 = vpop.f32.mrb[0].mxu0 }
 0x19e   : > { %v807_v17 = vpop.f32.mrb[1].mxu0 }
 0x19f   : > { %v1642_v18 = vpack.c.bf16 %v807_v17, %v805_v16  ;;  %v809_v19 = vpop.f32.mrb[2].mxu0 }
 0x1a0   : > { %v810_v20 = vpop.f32.mrb[3].mxu0 }
 0x1a1   : > { %905 = vst [vmem:[#allocation2] sm:$0xff] %v1642_v18  ;;  %v1937_v20 = vld [vmem:[#allocation9] ss:$12 sps:$4 sm:$0xff]  }
 0x1a2   : > { %1337 = vmatpush1.bf16.msra.mxu0 %v1937_v20 }
 0x1a3   : > { %1338 = vmatprep.subr.bf16.mxu0 %v1943_v23 }
 0x1a6   : > { %1339 = vmatpush1.bf16.msra.mxu0 %v1941_v25 }
 0x1a7   : > { %1340 = vmatprep.subr.bf16.mxu0 %v1947_v26 }
 0x1a8   : > { %v913_v32 = vld [vmem:[#allocation2 + $0x4] sm:$0xf]  ;;  %v1935_v35 = vld [vmem:[#allocation2] ss:$0 sps:$4 sm:$0xff]  }
 0x1a9   : > { %v1934_v33 = vld [vmem:[#allocation2 + $0x4] ss:$0 sps:$4 sm:$0xff]   ;;  %v920_v34 = vsel %vm915_vm1, %v913_v32, 0  ;;  %v912_v36 = vld [vmem:[#allocation2] sm:$0xf] }
 0x1aa   : > { %1714 = vmatpush3.bf16.xpose.msra.mxu1 %v920_v34  ;;  %1037 = vrot.lane.b32.xlu1 %v1934_v33, %s2143_s21  ;;  %v1955_v32 = vld [vmem:[#allocation9 + $0x64] ss:$12 sps:$4 sm:$0xff]   ;;  %v1956_v33 = vld [vmem:[#allocation9 + $0x68] ss:$12 sps:$4 sm:$0xff]   ;;  %v1953_v34 = vld [vmem:[#allocation9 + $0x60] ss:$12 sps:$4 sm:$0xff]  }
 0x1ab   : > { %1719 = vmatprep.subr.bf16.mxu1 %v2140_v56  ;;  %1341 = vmatpush1.bf16.msra.mxu0 %v1945_v28 }
 0x1ac   : > { %1342 = vmatprep.subr.bf16.mxu0 %v1951_v29 }
 0x1ae   : > { %1032 = vrot.lane.b32.xlu1 %v1935_v35, %s2143_s21  ;;  %v1959_v35 = vld [vmem:[#allocation9 + $0x7c] ss:$12 sps:$4 sm:$0xff]  }
 0x1af   : > { %1343 = vmatpush1.bf16.msra.mxu0 %v1949_v31 }
 0x1b0   : > { %1344 = vmatprep.subr.bf16.mxu0 %v1955_v32 }
 0x1b1   : > { %1716 = vmatmul.mubr.msk.bf16.vlgmr.msra.gmra.mrb[8].mxu1 %vm915_vm1, %v912_v36  ;;  %v1960_v36 = vld [vmem:[#allocation9 + $0x80] ss:$12 sps:$4 sm:$0xff]  }
 0x1b2   : > { %1720 = vmatpush3.bf16.msra.mxu1 %v981_v38  ;;  %1721 = vmatprep.mubr.msk.bf16.mxu1 %vm2142_vm0, %v2140_v56  ;;  %v1961_v38 = vld [vmem:[#allocation9 + $0x90] ss:$12 sps:$4 sm:$0xff]  }
 0x1b3   : > { %1725 = vmatprep.subr.bf16.mxu1 %v2140_v56  ;;  %1345 = vmatpush1.bf16.msra.mxu0 %v1953_v34 }
 0x1b4   : > { %1346 = vmatprep.subr.bf16.mxu0 %v1959_v35 }
 0x1b7   : > { %1347 = vmatpush1.bf16.msra.mxu0 %v1957_v37 }
 0x1b8   : > { %1348 = vmatprep.subr.bf16.mxu0 %v1963_v39 }
 0x1bb   : > { %1349 = vmatpush1.bf16.msra.mxu0 %v1961_v38 }
 0x21c   : > { %v1038_v57 = vpop.permute.xlu1 %1037 }
 0x21d   : > { %v1043_v59 = vsel %vm915_vm1, %v1038_v57, 0 }
 0x220   : > { %v1033_v60 = vpop.permute.xlu1 %1032 }
 0x284   : > { %v956_v42 = vpop.f32.mrb[8].mxu1 }
 0x285   : > { %v962_v43 = vsel %vm911_vm3, %v956_v42, -inf  ;;  %v1717_v44 = vpop.f32.mrb[9].mxu1  ;;  %v1967_v42 = vld [vmem:[#allocation9 + $0xac] ss:$12 sps:$4 sm:$0xff]  }
 0x286   : > { %v959_v45 = vpop.f32.mrb[10].mxu1  ;;  %v964_v46 = vsel %vm963_vm4, %v962_v43, -inf  ;;  %v1965_v44 = vld [vmem:[#allocation9 + $0xa8] ss:$12 sps:$4 sm:$0xff]   ;;  %1350 = vmatprep.subr.bf16.mxu0 %v1967_v42 }
 0x287   : > { %965 = vmax.xlane.f32.xlu0 %v964_v46  ;;  %v1718_v47 = vpop.f32.mrb[11].mxu1  ;;  %1351 = vmatpush1.bf16.msra.mxu0 %v1965_v44 }
 0x314   : > { %v966_v48 = vpop.xlane.xlu0 %965 }
 0x315   : > { %v967_v49 = vsub.f32 %v962_v43, %v966_v48  ;;  %v1968_v43 = vld [vmem:[#allocation9 + $0xb0] ss:$12 sps:$4 sm:$0xff]  }
 0x317   : > { %v968_v50 = vmul.f32 1.442695, %v967_v49 }
 0x319   : > { %1969 = vpow2.f32 %v968_v50 }
 0x323   : > { %v1970_v51 = vpop.eup %1969 }
 0x324   : > { %v970_v52 = vsel %vm963_vm4, %v1970_v51, 0.0 }
 0x325   : > { %971 = vadd.xlane.f32.xlu0 %v970_v52  ;;  %v1203_v52 = vsub.s32 2, %v2380_v40 }
 0x3b2   : > { %v972_v53 = vpop.xlane.xlu0 %971 }
 0x3b3   : > { %1971 = vrcp.f32 %v972_v53  ;;  %v1191_v53 = vld [vmem:[%s2472_s3] sm:$0x7] }
 0x3b4   : > { %v1204_v57 = vrot.slane %v1191_v53, %v1203_v52 }
 0x3bd   : > { %v1972_v54 = vpop.eup %1971 }
 0x3be   : > { %v974_v55 = vmul.f32 %v1972_v54, %v1970_v51  ;;  %v1199_v54 = vsub.s32 1, %v2380_v40 }
 0x3c0   : > { %v975_v58 = vpack.c.bf16 %v974_v55, %v974_v55 }
 0x3c2   : > { %1722 = vmatmul.mubr.msk.bf16.vlgmr.msra.gmra.mrb[12].mxu1 %vm963_vm4, %v975_v58  ;;  %v1200_v58 = vrot.slane %v1191_v53, %v1199_v54 }
 0x3c3   : > { %1726 = vmatpush3.bf16.xpose.msra.mxu1 %v1043_v59  ;;  %1727 = vmatprep.mubr.msk.bf16.mxu1 %vm2142_vm0, %v2140_v56 }
 0x3c4   : > { %1731 = vmatprep.subr.bf16.mxu1 %v2140_v56 }
 0x3ca   : > { %1728 = vmatmul.mubr.msk.bf16.vlgmr.msra.gmra.mrb[16].mxu1 %vm915_vm1, %v1033_v60 }
 0x3cb   : > { %1733 = vmatprep.mubr.msk.bf16.mxu1 %vm2142_vm0, %v2140_v56 }
 0x495   : > { %v1017_v61 = vpop.f32.mrb[12].mxu1 }
 0x496   : > { %v1023_v62 = vpack.c.bf16 %v1017_v61, %v1017_v61  ;;  %v1723_v63 = vpop.f32.mrb[13].mxu1 }
 0x497   : > { %v1020_v0 = vpop.f32.mrb[14].mxu1 }
 0x498   : > { %1025 = vst.msk [vmem:[#allocation3] sm:$0xf] %vm1024_vm5, %v1023_v62  ;;  %v1724_v1 = vpop.f32.mrb[15].mxu1 }
 0x49d   : > { %v1079_v2 = vpop.f32.mrb[16].mxu1 }
 0x49e   : > { %v1085_v3 = vsel %vm911_vm3, %v1079_v2, -inf  ;;  %v1729_v4 = vpop.f32.mrb[17].mxu1 }
 0x49f   : > { %v1082_v5 = vpop.f32.mrb[18].mxu1  ;;  %v1086_v6 = vsel %vm963_vm4, %v1085_v3, -inf }
 0x4a0   : > { %1087 = vmax.xlane.f32.xlu0 %v1086_v6  ;;  %v1730_v7 = vpop.f32.mrb[19].mxu1 }
 0x4b6   : > { %1101 = vrot.lane.b32.xlu0 %v1936_v8, %s2143_s21 }
 0x52d   : > { %v1088_v9 = vpop.xlane.xlu0 %1087 }
 0x52e   : > { %v1089_v10 = vsub.f32 %v1085_v3, %v1088_v9 }
 0x530   : > { %v1090_v11 = vmul.f32 1.442695, %v1089_v10 }
 0x531   : > { %v1102_v12 = vpop.permute.xlu0 %1101 }
 0x532   : > { %1973 = vpow2.f32 %v1090_v11  ;;  %v1107_v13 = vsel %vm979_vm2, %v1102_v12, 0 }
 0x533   : > { %1732 = vmatpush3.bf16.msra.mxu1 %v1107_v13 }
 0x534   : > { %1737 = vmatprep.subr.bf16.mxu1 %v2140_v56 }
 0x53c   : > { %v1974_v14 = vpop.eup %1973 }
 0x53d   : > { %v1092_v15 = vsel %vm963_vm4, %v1974_v14, 0.0 }
 0x53e   : > { %1093 = vadd.xlane.f32.xlu1 %v1092_v15 }
 0x5cb   : > { %v1094_v16 = vpop.xlane.xlu1 %1093 }
 0x5cc   : > { %1975 = vrcp.f32 %v1094_v16 }
 0x5d6   : > { %v1976_v17 = vpop.eup %1975 }
 0x5d7   : > { %v1096_v18 = vmul.f32 %v1976_v17, %v1974_v14 }
 0x5d9   : > { %v1097_v19 = vpack.c.bf16 %v1096_v18, %v1096_v18 }
 0x5db   : > { %1734 = vmatmul.mubr.msk.bf16.vlgmr.msra.gmra.mrb[20].mxu1 %vm963_vm4, %v1097_v19 }
 0x5dc   : > { %1753 = vmatprep.mubr.msk.bf16.mxu1 %vm2142_vm0, %v2140_v56  ;;  %1738 = vmatpush3.bf16.msra.mxu1 %v1940_v22 }
 0x5dd   : > { %1739 = vmatprep.subr.bf16.mxu1 %v2140_v56 }
 0x5e0   : > { %1740 = vmatpush3.bf16.msra.mxu1 %v1944_v24 }
 0x5e1   : > { %1741 = vmatprep.subr.bf16.mxu1 %v2140_v56 }
 0x5e4   : > { %1742 = vmatpush3.bf16.msra.mxu1 %v1948_v27 }
 0x5e5   : > { %1743 = vmatprep.subr.bf16.mxu1 %v2140_v56 }
 0x5e8   : > { %1744 = vmatpush3.bf16.msra.mxu1 %v1952_v30 }
 0x5e9   : > { %1745 = vmatprep.subr.bf16.mxu1 %v2140_v56 }
 0x5ec   : > { %1746 = vmatpush3.bf16.msra.mxu1 %v1956_v33 }
 0x5ed   : > { %1747 = vmatprep.subr.bf16.mxu1 %v2140_v56 }
 0x5f0   : > { %1748 = vmatpush3.bf16.msra.mxu1 %v1960_v36 }
 0x5f1   : > { %1749 = vmatprep.subr.bf16.mxu1 %v2140_v56 }
 0x5f4   : > { %1750 = vmatpush3.bf16.msra.mxu1 %v1964_v41 }
 0x5f5   : > { %1751 = vmatprep.subr.bf16.mxu1 %v2140_v56  ;;  %v1195_v56 = vsub.s32 0, %v2380_v40 }
 0x5f7   : > { %v1196_v55 = vrot.slane %v1191_v53, %v1195_v56 }
 0x5f8   : > { %1752 = vmatpush3.bf16.msra.mxu1 %v1968_v43 }
 0x6ae   : > { %v1143_v45 = vpop.f32.mrb[20].mxu1 }
 0x6af   : > { %v1644_v46 = vpack.c.bf16 %v1143_v45, %v1143_v45  ;;  %v1735_v47 = vpop.f32.mrb[21].mxu1 }
 0x6b0   : > { %v1146_v48 = vpop.f32.mrb[22].mxu1 }
 0x6b1   : > { %1153 = vrot.lane.b32.xlu0 %v1644_v46, %s2143_s21  ;;  %v1736_v49 = vpop.f32.mrb[23].mxu1 }
 0x723   : > { %v1154_v50 = vpop.permute.xlu0 %1153 }
 0x724   : > { %1157 = vst.msk [vmem:[#allocation3] sm:$0xf] %vm1156_vm6, %v1154_v50 }
 0x72b   : > { %v1158_v51 = vld [vmem:[#allocation3] sm:$0xf] }
 0x72c   : > { %1369 = vmatmul.mubr.bf16.vlgmr.msra.gmra.mrb[4].mxu0 %v1158_v51  ;;  %1754 = vmatmul.mubr.bf16.vlgmr.msra.gmra.mrb[24].mxu1 %v1158_v51 }
 0x7ff   : > { %v1370_v59 = vpop.f32.mrb[4].mxu0  ;;  %v1411_v60 = vpop.f32.mrb[24].mxu1 }
 0x800   : > { %v1371_v61 = vadd.f32 %v1370_v59, %v1196_v55  ;;  %v1412_v62 = vadd.f32 %v1411_v60, %v1204_v57  ;;  %v1372_v63 = vpop.f32.mrb[5].mxu0  ;;  %v1755_v0 = vpop.f32.mrb[25].mxu1 }
 0x801   : > { %v1373_v1 = vadd.f32 %v1372_v63, %v1200_v58  ;;  %v1374_v2 = vpop.f32.mrb[6].mxu0  ;;  %v1414_v3 = vpop.f32.mrb[26].mxu1 }
 0x802   : > { %1417 = vst [vmem:[%s242_s5] sm:$0xff] %v1371_v61  ;;  %1419 = vst [vmem:[%s242_s5 + $0x10] sm:$0xff] %v1412_v62  ;;  %v1375_v40 = vpop.f32.mrb[7].mxu0  ;;  %v1756_v4 = vpop.f32.mrb[27].mxu1 }
 0x803   : > { %1418 = vst [vmem:[%s242_s5 + $0x8] sm:$0xff] %v1373_v1 }
 0x804   : > { %2076 = shalt.err (!%p2073_p2)
}
 0x805   : > { %s2077_s30 = scalar_lea.hbm %s2425_s28, 384  ;;  %s2081_s8 = scalar_lea.hbm %s2473_s4, 768 }
 0x806   : > { %p2078_p13 = scmp.ne.s32.totalorder %s2425_s28, %s2077_s30  ;;  %p2082_p4 = scmp.lt.u32.totalorder %s2425_s28, %s2473_s4 }
 0x807   : > { %p2083_p5 = scmp.lt.u32.totalorder %s2081_s8, %s2077_s30  ;;  %p2085_p11 = scmp.lt.u32.totalorder %s2077_s30, %s2425_s28 }
 0x808   : > { %p2079_p6 = pnand %p2078_p13, %p2487_p0 }
 0x809   : > { %p2084_p8 = por %p2083_p5, %p2082_p4 }
 0x80a   : > { %p2080_p10 = pneg %p2079_p6 }
 0x80b   : > { %p2086_p1 = por %p2085_p11, %p2084_p8 }
 0x80d   : > { %p2087_p3 = pnand %p2086_p1, %p2080_p10 }
 0x80f   : > { %2090 = shalt.err (!%p2087_p3)
}
 0x810   : > { %1775 = dma.vmem_to_hbm [thread:$0]  (%p2487_p0), %s2427_s6, 384, %s2425_s28, %s1421_s19  }
 0x811 PF: > { %s1447_s11 = sand.u32 1, %s2121_s15   ;;  %p2488_p7 = scmp.ne.s32.totalorder %s2478_s22, 0 }
 0x812   : > { %p2489_p9 = scmp.ge.s32.totalorder %s2133_s18, 2  ;;  %s1448_s29 = scalar_lea.sflag [#allocation6], %s1447_s11 }
 0x814   : > { %p1789_p12 = pnand %p2489_p9, %p2488_p7 }
 0x816   : > { %2116 = dma.done.wait (!%p1789_p12), %s1448_s29, 384  }
 0x817   : > { %2118 = vsyncadd (!%p1789_p12), %s1448_s29, 4294966912  ;;  %p18_p2 = scmp.ge.s32.totalorder %s2280_s9, 4   ;;  %s2490_s15 = smov %s2125_s16 }
 0x818   : > { %s2491_s16 = smov %s2129_s17  ;;  %s2492_s17 = smov %s2296_s14 }
 0x819   : > { %s2493_s18 = smov %s2280_s9  ;;  %20 = sbr.rel (!%p18_p2) target bundleno = 6 (0x6), region = 89 }
 0x820   :  { %1453 = vsyncpa [#allocation5], 1 }
 0x821   :  { %1455 = vsyncpa [#allocation5 + $0x1], 1 }
 0x822   :  { %1456 = vsyncpa [#allocation8], 1 }
 0x823   :  { %1457 = vsyncpa [#allocation6], 1 }
 0x824   :  { %1459 = vsyncpa [#allocation6 + $0x1], 1 }

</bundles_post_ra>
